<compile_context>
chip_gen: v6e
topology: v6e:2x2x1
jax: 0.10.0
libtpu: 0.0.40
codegen_flags: <defaults>
</compile_context>

<pallas_src>
import math

import jax
import jax.numpy as jnp
from jax.experimental import pallas as pl
from jax.experimental.pallas import tpu as pltpu


def _prenorm_kernel(x_ref, shift_ref, scale_ref, o_ref):
    # Pure VPU elementwise hot path: (x + shift) * scale.
    # shift/scale are (1, lane) tiles that broadcast over the sublane (row)
    # axis of the (tm, lane) data tile.
    o_ref[...] = (x_ref[...] + shift_ref[...]) * scale_ref[...]


def prenorm_forward(x, shift=None, scale=None, *, target_block_bytes=2 << 20):
    """Apply PreNormLayer forward: (x + shift) * scale.

    x:     array whose last dim == n_units
    shift: (n_units,) or None (treated as zeros)
    scale: (n_units,) or None (treated as ones)
    """
    if shift is None and scale is None:
        raise ValueError("PreNormLayer requires shift and/or scale")

    orig_shape = x.shape
    dtype = x.dtype
    n_units = (shift if shift is not None else scale).shape[0]
    assert x.shape[-1] == n_units, "last dim must equal n_units"

    if shift is None:
        shift = jnp.zeros((n_units,), dtype=dtype)
    if scale is None:
        scale = jnp.ones((n_units,), dtype=dtype)

    total = x.size

    # --- lane-dense layout -------------------------------------------------
    # Fold consecutive feature vectors into a last dim that is both a multiple
    # of 128 (full lanes) and a multiple of n_units (so tiled params line up
    # exactly with the row-major element order).
    lane = math.lcm(n_units, 128)
    reps = lane // n_units

    rows = pl.cdiv(total, lane)

    # --- block sizing ------------------------------------------------------
    # Target ~target_block_bytes per block (default 2 MiB). With input+output
    # double-buffered that is ~4x resident, comfortably under every
    # generation's VMEM once we raise the scoped limit explicitly.
    itemsize = x.dtype.itemsize
    tm = max(8, (target_block_bytes // (lane * itemsize)) // 8 * 8)
    rows_up8 = pl.cdiv(rows, 8) * 8
    tm = min(tm, rows_up8)          # never a block bigger than the (padded) array

    grid = pl.cdiv(rows, tm)
    padded_rows = grid * tm
    padded_total = padded_rows * lane

    x_flat = x.reshape(-1)
    if padded_total != total:
        # Pad with zeros; the padded tail is computed but sliced off below.
        x_flat = jnp.pad(x_flat, (0, padded_total - total))
    x2 = x_flat.reshape(padded_rows, lane)

    # Tile params once to the lane width; they stay resident across the grid.
    shift2 = jnp.tile(shift.astype(dtype), reps).reshape(1, lane)
    scale2 = jnp.tile(scale.astype(dtype), reps).reshape(1, lane)

    out2 = pl.pallas_call(
        _prenorm_kernel,
        out_shape=jax.ShapeDtypeStruct((padded_rows, lane), dtype),
        grid_spec=pltpu.PrefetchScalarGridSpec(
            num_scalar_prefetch=0,
            grid=(grid,),
            in_specs=[
                pl.BlockSpec((tm, lane), lambda i: (i, 0)),
                pl.BlockSpec((1, lane), lambda i: (0, 0)),
                pl.BlockSpec((1, lane), lambda i: (0, 0)),
            ],
            out_specs=pl.BlockSpec((tm, lane), lambda i: (i, 0)),
        ),
        compiler_params=pltpu.CompilerParams(
            dimension_semantics=("parallel",),
            vmem_limit_bytes=32 << 20,
        ),
    )(x2, shift2, scale2)

    out_flat = out2.reshape(-1)
    if padded_total != total:
        out_flat = out_flat[:total]
    return out_flat.reshape(orig_shape)


if __name__ == "__main__":
    key = jax.random.PRNGKey(0)
    k_x, k_x2, k_shift, k_scale = jax.random.split(key, 4)

    # Small shapes consistent with the module: GAT node features with
    # n_units = 32 hidden size.
    n_units = 32
    shift = 0.1 * jax.random.normal(k_shift, (n_units,), dtype=jnp.float32)
    scale = 1.0 + 0.1 * jax.random.normal(k_scale, (n_units,), dtype=jnp.float32)

    # Case 1: row count divisible by the folded-lane layout (128 nodes).
    x_a = jax.random.normal(k_x, (128, n_units), dtype=jnp.float32)
    out_a = jax.block_until_ready(prenorm_forward(x_a, shift, scale))
    ref_a = (x_a + shift[None, :]) * scale[None, :]
    assert jnp.allclose(out_a, ref_a, atol=1e-6, rtol=1e-6), "mismatch (case 1)"

    # Case 2: non-divisible row count (100 nodes) — exercises the padding path.
    x_b = jax.random.normal(k_x2, (100, n_units), dtype=jnp.float32)
    out_b = jax.block_until_ready(prenorm_forward(x_b, shift, scale))
    ref_b = (x_b + shift[None, :]) * scale[None, :]
    assert jnp.allclose(out_b, ref_b, atol=1e-6, rtol=1e-6), "mismatch (case 2)"

    # TODO(synk): pre-training paths (start_updates/update_stats/stop_updates,
    # PreNormException) are host-side training logic, not part of the kernel.

    print("KERNEL_OK")
</pallas_src>

<mosaic_0001>
module attributes {stable_mosaic.version = 11 : i64} {
  func.func @_prenorm_kernel(%arg0: i32, %arg1: memref<32x128xf32, #tpu.memory_space<vmem>>, %arg2: memref<1x128xf32, #tpu.memory_space<vmem>>, %arg3: memref<1x128xf32, #tpu.memory_space<vmem>>, %arg4: memref<32x128xf32, #tpu.memory_space<vmem>>) attributes {dimension_semantics = [#tpu.dimension_semantics<parallel>], iteration_bounds = array<i64: 1>, scalar_prefetch = 0 : i64, scratch_operands = 0 : i64, tpu.core_type = #tpu.core_type<tc>, window_params = [{transform_indices = @transform_0, window_bounds = array<i64: 32, 128>}, {pipeline_mode = #tpu.pipeline_mode<synchronous>, transform_indices = @transform_1, window_bounds = array<i64: 1, 128>}, {pipeline_mode = #tpu.pipeline_mode<synchronous>, transform_indices = @transform_2, window_bounds = array<i64: 1, 128>}, {transform_indices = @transform_3, window_bounds = array<i64: 32, 128>}]} {
    %c0 = arith.constant 0 : index
    %c0_0 = arith.constant 0 : index
    %0 = vector.load %arg1[%c0, %c0_0] : memref<32x128xf32, #tpu.memory_space<vmem>>, vector<32x128xf32>
    %c0_1 = arith.constant 0 : index
    %c0_2 = arith.constant 0 : index
    %1 = vector.load %arg2[%c0_1, %c0_2] : memref<1x128xf32, #tpu.memory_space<vmem>>, vector<1x128xf32>
    %2 = vector.broadcast %1 : vector<1x128xf32> to vector<32x128xf32>
    %3 = arith.addf %0, %2 : vector<32x128xf32>
    %c0_3 = arith.constant 0 : index
    %c0_4 = arith.constant 0 : index
    %4 = vector.load %arg3[%c0_3, %c0_4] : memref<1x128xf32, #tpu.memory_space<vmem>>, vector<1x128xf32>
    %5 = vector.broadcast %4 : vector<1x128xf32> to vector<32x128xf32>
    %6 = arith.mulf %3, %5 : vector<32x128xf32>
    %c0_5 = arith.constant 0 : index
    %c0_6 = arith.constant 0 : index
    %7 = vector.load %arg4[%c0_5, %c0_6] : memref<32x128xf32, #tpu.memory_space<vmem>>, vector<32x128xf32>
    tpu.vector_store %arg4[%c0_5, %c0_6], %6 {strides = array<i32>} : memref<32x128xf32, #tpu.memory_space<vmem>>, vector<32x128xf32>,
    return
  }
  func.func @transform_0(%arg0: i32) -> (i32, i32) {
    %c0_i32 = arith.constant 0 : i32
    %c0_i32_0 = arith.constant 0 : i32
    return %arg0, %c0_i32 : i32, i32
  }
  func.func @transform_1(%arg0: i32) -> (i32, i32) {
    %c0_i32 = arith.constant 0 : i32
    %c0_i32_0 = arith.constant 0 : i32
    %c0_i32_1 = arith.constant 0 : i32
    return %c0_i32, %c0_i32_0 : i32, i32
  }
  func.func @transform_2(%arg0: i32) -> (i32, i32) {
    %c0_i32 = arith.constant 0 : i32
    %c0_i32_0 = arith.constant 0 : i32
    %c0_i32_1 = arith.constant 0 : i32
    return %c0_i32, %c0_i32_0 : i32, i32
  }
  func.func @transform_3(%arg0: i32) -> (i32, i32) {
    %c0_i32 = arith.constant 0 : i32
    %c0_i32_0 = arith.constant 0 : i32
    return %arg0, %c0_i32 : i32, i32
  }
}

</mosaic_0001>

<bundles_post_ra>
// kernel: tpu_custom_call.1
= control target key start
LH: loop header
LB: loop body
LE: loop exit
PB: predicated region body
PF: predicated region fallthrough
CT: control target
= control target key end

     0   :  { %8 = vsyncpa [#allocation3], 0  ;;  %s168_s0 = inlined_call_operand.hbm [shape: f32[32,128], index: 0, kind: input, shape index: {}]   ;;  %s169_s1 = inlined_call_operand.vmem [shape: f32[1,128], index: 1, kind: input, shape index: {}]   ;;  %s170_s2 = inlined_call_operand.vmem [shape: f32[1,128], index: 2, kind: input, shape index: {}]   ;;  %s171_s3 = inlined_call_operand.hbm [shape: f32[32,128], index: 3, kind: output, shape index: {}]  }
   0x1   :  { %9 = vsyncpa [#allocation4], 0  ;;  %s126_s12 = smov [#allocation2]  }
   0x2   :  { %s15_s13 = sshll.u32 %s126_s12, 4  ;;  %s16_s13 = int_to_ptr.vmem [resolvable:$true] %s15_s13 }
   0x3   :  { %s90_s14 = scalar_lea.vmem %s16_s13, 512  ;;  %p95_p1 = scmp.lt.s32.totalorder %s16_s13, %s16_s13 }
   0x4   :  { %p91_p0 = scmp.ne.s32.totalorder %s16_s13, %s90_s14  ;;  %p96_p2 = scmp.lt.s32.totalorder %s90_s14, %s90_s14 }
   0x6   :  { %p97_p3 = por %p96_p2, %p95_p1 }
   0x8   :  { %p98_p4 = pnand %p97_p3, %p91_p0 }
   0xa   :  { %101 = shalt.err (!%p98_p4)
}
   0xb   :  { %s127_s15 = smov 128   ;;  %s128_s16 = smov 8  }
   0xc   :  { %21 = dma.hbm_to_vmem [thread:$0]  %s168_s0, 512, %s16_s13, [#allocation3], %s127_s15, %s127_s15, %s128_s16  }
   0xd   :  { %122 = dma.done.wait [#allocation3], 512  }
   0xe   :  { %123 = vsyncadd [#allocation3], 4294966784  ;;  %v29_v0 = vld [vmem:[#allocation2] sm:$0xff]  ;;  %v30_v4 = vld [vmem:[#allocation2 + $0x8] sm:$0xff]  ;;  %s129_s23 = smov [#allocation5]  }
   0xf   :  { %v76_v1 = vld [vmem:[%s169_s1] ss:$0 sm:$0xff]  ;;  %v31_v5 = vld [vmem:[#allocation2 + $0x10] sm:$0xff]  ;;  %v32_v6 = vld [vmem:[#allocation2 + $0x18] sm:$0xff]  ;;  %s64_s24 = sshll.u32 %s129_s23, 4  ;;  %s65_s24 = int_to_ptr.vmem [resolvable:$true] %s64_s24 }
  0x10   :  { %v77_v2 = vld [vmem:[%s170_s2] ss:$0 sm:$0xff]  ;;  %v40_v3 = vadd.f32 %v76_v1, %v29_v0  ;;  %v41_v7 = vadd.f32 %v76_v1, %v30_v4  ;;  %v42_v8 = vadd.f32 %v76_v1, %v31_v5  ;;  %v43_v9 = vadd.f32 %v76_v1, %v32_v6  ;;  %s102_s0 = scalar_lea.vmem %s65_s24, 512  ;;  %p107_p6 = scmp.lt.s32.totalorder %s65_s24, %s65_s24 }
  0x11   :  { %p103_p5 = scmp.ne.s32.totalorder %s65_s24, %s102_s0  ;;  %p108_p7 = scmp.lt.s32.totalorder %s102_s0, %s102_s0 }
  0x12   :  { %v51_v10 = vmul.f32 %v77_v2, %v40_v3  ;;  %v52_v11 = vmul.f32 %v77_v2, %v41_v7  ;;  %v53_v12 = vmul.f32 %v77_v2, %v42_v8  ;;  %v54_v13 = vmul.f32 %v77_v2, %v43_v9 }
  0x13   :  { %p109_p8 = por %p108_p7, %p107_p6 }
  0x14   :  { %55 = vst [vmem:[#allocation5] sm:$0xff] %v51_v10  ;;  %56 = vst [vmem:[#allocation5 + $0x8] sm:$0xff] %v52_v11 }
  0x15   :  { %57 = vst [vmem:[#allocation5 + $0x10] sm:$0xff] %v53_v12  ;;  %58 = vst [vmem:[#allocation5 + $0x18] sm:$0xff] %v54_v13  ;;  %p110_p9 = pnand %p109_p8, %p103_p5 }
  0x17   :  { %113 = shalt.err (!%p110_p9)
}
  0x18   :  { %70 = dma.vmem_to_hbm [thread:$0]  %s65_s24, 512, %s171_s3, [#allocation4], %s127_s15, %s127_s15, %s128_s16  }
  0x19   :  { %124 = dma.done.wait [#allocation4], 512  }
  0x1a   :  { %125 = vsyncadd [#allocation4], 4294966784 }
  0x1b   :  { %74 = vsyncpa [#allocation3], 1 }
  0x1c   :  { %75 = vsyncpa [#allocation4], 1 }

</bundles_post_ra>
